<compile_context>
chip_gen: v6e
topology: v6e:2x2x1
jax: 0.10.0
libtpu: 0.0.40
codegen_flags: <defaults>
</compile_context>

<pallas_src>
import functools
import math

import jax
import jax.numpy as jnp
from jax.experimental import pallas as pl
from jax.experimental.pallas import tpu as pltpu

# ----------------------------- config ---------------------------------------
VOCAB = 128
HIDDEN = 32
LAYERS = 2
HEADS = 2
HEAD_DIM = HIDDEN // HEADS
INTER = 64
MAX_POS = 32
TYPE_VOCAB = 2
NUM_LABELS = 3
CLS_PAD = 128          # lane-dense classifier output width (slice to 3 outside)
LN_EPS = 1e-12
B, S = 2, 8

_GELU_C = 0.7978845608028654   # sqrt(2/pi)

# rows of the packed per-layer small-parameter tensor [LAYERS, 8, 3*HIDDEN]
_ROW_QKV_B, _ROW_O_B, _ROW_LN1_G, _ROW_LN1_B = 0, 1, 2, 3
_ROW_FF1_B, _ROW_FF2_B, _ROW_LN2_G, _ROW_LN2_B = 4, 5, 6, 7


# --------------------------- fused encoder kernel ---------------------------
def _ln(v, g, b):
    mu = jnp.mean(v, axis=-1, keepdims=True)
    var = jnp.mean(jnp.square(v - mu), axis=-1, keepdims=True)
    return (v - mu) * jax.lax.rsqrt(var + LN_EPS) * g + b


def _bert_encoder_kernel(
    # per-batch-tile inputs
    x0_ref, bias_ref,
    # per-layer stacked weights (grid axis 1 selects the layer)
    qkv_w_ref, o_w_ref, ff1_w_ref, ff2_w_ref, sp_ref,
    # classifier (constant)
    cls_w_ref, cls_b_ref,
    # output
    out_ref,
    # scratch
    x_vmem, qkv_sc, ctx_sc,
    *, seq,
):
    layer = pl.program_id(1)

    # ---- layer 0 of each batch tile: load embeddings into the VMEM carry ----
    @pl.when(layer == 0)
    def _():
        x_vmem[...] = x0_ref[0]

    x = x_vmem[...]                                        # [S, H]

    # ---- unpack the packed per-layer small parameters ----
    sp = sp_ref[0]                                         # [8, 3H]
    qkv_b = sp[_ROW_QKV_B:_ROW_QKV_B + 1, :]               # [1, 3H]
    o_b   = sp[_ROW_O_B:_ROW_O_B + 1, :HIDDEN]
    ln1_g = sp[_ROW_LN1_G:_ROW_LN1_G + 1, :HIDDEN]
    ln1_b = sp[_ROW_LN1_B:_ROW_LN1_B + 1, :HIDDEN]
    ff1_b = sp[_ROW_FF1_B:_ROW_FF1_B + 1, :INTER]
    ff2_b = sp[_ROW_FF2_B:_ROW_FF2_B + 1, :HIDDEN]
    ln2_g = sp[_ROW_LN2_G:_ROW_LN2_G + 1, :HIDDEN]
    ln2_b = sp[_ROW_LN2_B:_ROW_LN2_B + 1, :HIDDEN]

    # ---- fused QKV projection: one [H, 3H] MXU contraction ----
    qkv = jnp.dot(x, qkv_w_ref[0], preferred_element_type=jnp.float32) + qkv_b

    # ---- head-major relayout through VMEM scratch (plain stores; no
    #      in-kernel transposes / concatenates) ----
    for h in range(HEADS):
        c0 = h * HEAD_DIM
        qkv_sc[0, h, :, :] = qkv[:, c0:c0 + HEAD_DIM]
        qkv_sc[1, h, :, :] = qkv[:, HIDDEN + c0:HIDDEN + c0 + HEAD_DIM]
        qkv_sc[2, h, :, :] = qkv[:, 2 * HIDDEN + c0:2 * HIDDEN + c0 + HEAD_DIM]
    q = qkv_sc[0]                                          # [HEADS, S, Dh]
    k = qkv_sc[1]
    v = qkv_sc[2]

    # ---- head-batched attention: two MXU contractions total ----
    bias3 = bias_ref[...]                                  # [1, 1, S] additive mask
    s = jnp.einsum("hqd,hkd->hqk", q, k, preferred_element_type=jnp.float32)
    s = s * (1.0 / math.sqrt(HEAD_DIM)) + bias3
    s = s - jnp.max(s, axis=-1, keepdims=True)
    p = jnp.exp(s)
    p = p * pl.reciprocal(jnp.sum(p, axis=-1, keepdims=True), approx=True)
    ctx = jnp.einsum("hqk,hkd->hqd", p, v, preferred_element_type=jnp.float32)

    # merge heads back to [S, H] via scratch stores (no concatenate)
    for h in range(HEADS):
        ctx_sc[:, h * HEAD_DIM:(h + 1) * HEAD_DIM] = ctx[h]

    # ---- attention output projection + residual + LN ----
    attn_out = (jnp.dot(ctx_sc[...], o_w_ref[0], preferred_element_type=jnp.float32)
                + o_b)
    x = _ln(x + attn_out, ln1_g, ln1_b)

    # ---- FFN: tanh-GELU(x W1 + b1) W2 + b2, residual + LN ----
    h_mid = jnp.dot(x, ff1_w_ref[0], preferred_element_type=jnp.float32) + ff1_b
    h_mid = 0.5 * h_mid * (1.0 + jnp.tanh(_GELU_C * (h_mid + 0.044715 * h_mid * h_mid * h_mid)))
    ffn = jnp.dot(h_mid, ff2_w_ref[0], preferred_element_type=jnp.float32) + ff2_b
    x = _ln(x + ffn, ln2_g, ln2_b)
    x_vmem[...] = x

    # ---- last layer: token-classification head (lane-dense 128-wide slab) ----
    @pl.when(layer == LAYERS - 1)
    def _():
        out_ref[0] = (jnp.dot(x, cls_w_ref[...], preferred_element_type=jnp.float32)
                      + cls_b_ref[...])


def bert_encoder(x0, bias, p, *, batch, seq):
    batch_map = lambda b, l: (b, 0, 0)     # per-batch-tile arrays
    layer_map = lambda b, l: (l, 0, 0)     # per-layer stacked arrays
    const_map = lambda b, l: (0, 0)        # constant 2-D arrays

    in_specs = [
        pl.BlockSpec((1, seq, HIDDEN), batch_map),          # x0 (post-emb-LN)
        pl.BlockSpec((1, 1, seq), batch_map),               # mask bias [B,1,S]
        pl.BlockSpec((1, HIDDEN, 3 * HIDDEN), layer_map),   # qkv_w
        pl.BlockSpec((1, HIDDEN, HIDDEN), layer_map),       # o_w
        pl.BlockSpec((1, HIDDEN, INTER), layer_map),        # ff1_w
        pl.BlockSpec((1, INTER, HIDDEN), layer_map),        # ff2_w
        pl.BlockSpec((1, 8, 3 * HIDDEN), layer_map),        # packed small params
        pl.BlockSpec((HIDDEN, CLS_PAD), const_map),         # cls_w (128-padded)
        pl.BlockSpec((1, CLS_PAD), const_map),              # cls_b (128-padded)
    ]

    return pl.pallas_call(
        functools.partial(_bert_encoder_kernel, seq=seq),
        out_shape=jax.ShapeDtypeStruct((batch, seq, CLS_PAD), jnp.float32),
        grid=(batch, LAYERS),
        in_specs=in_specs,
        out_specs=pl.BlockSpec((1, seq, CLS_PAD), batch_map),
        scratch_shapes=[
            pltpu.VMEM((seq, HIDDEN), jnp.float32),               # activation carry
            pltpu.VMEM((3, HEADS, seq, HEAD_DIM), jnp.float32),   # head-major q/k/v
            pltpu.VMEM((seq, HIDDEN), jnp.float32),               # merged context
        ],
        compiler_params=pltpu.CompilerParams(
            # batch tiles are independent (megacore on v7x); layers carry state
            dimension_semantics=("parallel", "arbitrary")),
    )(x0, bias, p["qkv_w"], p["o_w"], p["ff1_w"], p["ff2_w"], p["small"],
      p["cls_w"], p["cls_b"])


# --------------------------- parameters -------------------------------------
def init_params(key):
    keys = iter(jax.random.split(key, 24))

    def norm(shape, scale=0.02):
        return scale * jax.random.normal(next(keys), shape, jnp.float32)

    # packed per-layer small params: [LAYERS, 8, 3*HIDDEN]
    small = jnp.zeros((LAYERS, 8, 3 * HIDDEN), jnp.float32)
    small = small.at[:, _ROW_QKV_B, :3 * HIDDEN].set(norm((LAYERS, 3 * HIDDEN)))
    small = small.at[:, _ROW_O_B, :HIDDEN].set(norm((LAYERS, HIDDEN)))
    small = small.at[:, _ROW_LN1_G, :HIDDEN].set(1.0 + norm((LAYERS, HIDDEN)))
    small = small.at[:, _ROW_LN1_B, :HIDDEN].set(norm((LAYERS, HIDDEN)))
    small = small.at[:, _ROW_FF1_B, :INTER].set(norm((LAYERS, INTER)))
    small = small.at[:, _ROW_FF2_B, :HIDDEN].set(norm((LAYERS, HIDDEN)))
    small = small.at[:, _ROW_LN2_G, :HIDDEN].set(1.0 + norm((LAYERS, HIDDEN)))
    small = small.at[:, _ROW_LN2_B, :HIDDEN].set(norm((LAYERS, HIDDEN)))

    params = {
        "word_emb": norm((VOCAB, HIDDEN)),
        "pos_emb": norm((MAX_POS, HIDDEN)),
        "type_emb": norm((TYPE_VOCAB, HIDDEN)),
        "emb_ln_g": jnp.ones((HIDDEN,), jnp.float32),
        "emb_ln_b": jnp.zeros((HIDDEN,), jnp.float32),
        # per-layer weights stacked along a leading LAYERS axis
        "qkv_w": norm((LAYERS, HIDDEN, 3 * HIDDEN)),
        "o_w": norm((LAYERS, HIDDEN, HIDDEN)),
        "ff1_w": norm((LAYERS, HIDDEN, INTER)),
        "ff2_w": norm((LAYERS, INTER, HIDDEN)),
        "small": small,
    }
    # classifier, zero-padded to 128 output lanes (lane-dense unmasked stores)
    cls_w = norm((HIDDEN, NUM_LABELS))
    params["cls_w"] = jnp.zeros((HIDDEN, CLS_PAD), jnp.float32).at[:, :NUM_LABELS].set(cls_w)
    params["cls_b"] = jnp.zeros((1, CLS_PAD), jnp.float32)
    return params


# ----------------------------- forward --------------------------------------
def bert_forward(params, input_id, mask, label):
    Bsz, Sq = input_id.shape

    # --- embeddings + embedding LayerNorm (tiny elementwise op, plain JAX) ---
    we = params["word_emb"][input_id]                      # [B,S,H]
    pe = params["pos_emb"][:Sq][None, :, :]                # [1,S,H]
    te = params["type_emb"][0][None, None, :]              # token_type_ids = 0
    emb = we + pe + te
    mu = jnp.mean(emb, axis=-1, keepdims=True)
    var = jnp.mean(jnp.square(emb - mu), axis=-1, keepdims=True)
    x0 = (emb - mu) * jax.lax.rsqrt(var + LN_EPS) * params["emb_ln_g"] + params["emb_ln_b"]

    # --- additive attention-mask bias, [B,1,S] ---
    bias = ((1.0 - mask.astype(jnp.float32)) * (-1e9))[:, None, :]

    # --- fused encoder + classifier (one pallas_call) ---
    logits_pad = bert_encoder(x0, bias, params, batch=Bsz, seq=Sq)   # [B,S,128]
    logits = logits_pad[..., :NUM_LABELS]                            # [B,S,3]

    # --- cross-entropy loss, ignore_index=-100 (HF BertForTokenClassification) ---
    logits_flat = logits.reshape(-1, NUM_LABELS)
    labels_flat = label.reshape(-1)
    valid = labels_flat != -100
    safe = jnp.where(valid, labels_flat, 0)
    lse = jax.scipy.special.logsumexp(logits_flat, axis=-1)
    picked = jnp.take_along_axis(logits_flat, safe[:, None], axis=-1)[:, 0]
    nll = lse - picked
    denom = jnp.maximum(jnp.sum(valid.astype(jnp.float32)), 1.0)
    loss = jnp.sum(jnp.where(valid, nll, 0.0)) / denom

    # return_dict=False with labels -> (loss, logits)
    return loss, logits


# ------------------------------- main ----------------------------------------
if __name__ == "__main__":
    key = jax.random.PRNGKey(0)
    kp, ki, km, kl = jax.random.split(key, 4)

    params = init_params(kp)

    input_id = jax.random.randint(ki, (B, S), 0, VOCAB, dtype=jnp.int32)
    # attention mask: last 2 positions of each sequence are padding
    mask = jnp.concatenate(
        [jnp.ones((B, S - 2), jnp.int32), jnp.zeros((B, 2), jnp.int32)], axis=1
    )
    labels_raw = jax.random.randint(kl, (B, S), 0, NUM_LABELS, dtype=jnp.int32)
    label = jnp.where(mask == 1, labels_raw, -100)

    fwd = jax.jit(functools.partial(bert_forward, params))
    loss, logits = fwd(input_id, mask, label)
    jax.block_until_ready((loss, logits))

    assert logits.shape == (B, S, NUM_LABELS)
    assert loss.shape == ()
    assert bool(jnp.isfinite(loss))
    print("KERNEL_OK")
</pallas_src>

<mosaic_0001>
module attributes {stable_mosaic.version = 11 : i64} {
  func.func @_bert_encoder_kernel(%arg0: i32, %arg1: i32, %arg2: memref<1x8x32xf32, #tpu.memory_space<vmem>>, %arg3: memref<1x1x8xf32, #tpu.memory_space<vmem>>, %arg4: memref<1x32x96xf32, #tpu.memory_space<vmem>>, %arg5: memref<1x32x32xf32, #tpu.memory_space<vmem>>, %arg6: memref<1x32x64xf32, #tpu.memory_space<vmem>>, %arg7: memref<1x64x32xf32, #tpu.memory_space<vmem>>, %arg8: memref<1x8x96xf32, #tpu.memory_space<vmem>>, %arg9: memref<32x128xf32, #tpu.memory_space<vmem>>, %arg10: memref<1x128xf32, #tpu.memory_space<vmem>>, %arg11: memref<1x8x128xf32, #tpu.memory_space<vmem>>, %arg12: memref<8x32xf32, #tpu.memory_space<vmem>>, %arg13: memref<3x2x8x16xf32, #tpu.memory_space<vmem>>, %arg14: memref<8x32xf32, #tpu.memory_space<vmem>>) attributes {dimension_semantics = [#tpu.dimension_semantics<parallel>, #tpu.dimension_semantics<arbitrary>], iteration_bounds = array<i64: 2, 2>, scalar_prefetch = 0 : i64, scratch_operands = 3 : i64, tpu.core_type = #tpu.core_type<tc>, window_params = [{transform_indices = @transform_0, window_bounds = array<i64: 1, 8, 32>}, {transform_indices = @transform_1, window_bounds = array<i64: 1, 1, 8>}, {transform_indices = @transform_2, window_bounds = array<i64: 1, 32, 96>}, {transform_indices = @transform_3, window_bounds = array<i64: 1, 32, 32>}, {transform_indices = @transform_4, window_bounds = array<i64: 1, 32, 64>}, {transform_indices = @transform_5, window_bounds = array<i64: 1, 64, 32>}, {transform_indices = @transform_6, window_bounds = array<i64: 1, 8, 96>}, {pipeline_mode = #tpu.pipeline_mode<synchronous>, transform_indices = @transform_7, window_bounds = array<i64: 32, 128>}, {pipeline_mode = #tpu.pipeline_mode<synchronous>, transform_indices = @transform_8, window_bounds = array<i64: 1, 128>}, {transform_indices = @transform_9, window_bounds = array<i64: 1, 8, 128>}]} {
    %c0_i32 = arith.constant 0 : i32
    %0 = arith.cmpi eq, %arg1, %c0_i32 : i32
    %1 = arith.extui %0 : i1 to i32
    %c0_i32_0 = arith.constant 0 : i32
    %2 = arith.cmpi ne, %1, %c0_i32_0 : i32
    scf.if %2 {
      %c0_84 = arith.constant 0 : index
      %c0_85 = arith.constant 0 : index
      %c0_86 = arith.constant 0 : index
      %151 = vector.load %arg2[%c0_84, %c0_85, %c0_86] : memref<1x8x32xf32, #tpu.memory_space<vmem>>, vector<1x8x32xf32>
      %152 = vector.shape_cast %151 : vector<1x8x32xf32> to vector<8x32xf32>
      %c0_87 = arith.constant 0 : index
      %c0_88 = arith.constant 0 : index
      %153 = vector.load %arg12[%c0_87, %c0_88] : memref<8x32xf32, #tpu.memory_space<vmem>>, vector<8x32xf32>
      tpu.vector_store %arg12[%c0_87, %c0_88], %152 {strides = array<i32>} : memref<8x32xf32, #tpu.memory_space<vmem>>, vector<8x32xf32>,
    } else {
    }
    %c0 = arith.constant 0 : index
    %c0_1 = arith.constant 0 : index
    %3 = vector.load %arg12[%c0, %c0_1] : memref<8x32xf32, #tpu.memory_space<vmem>>, vector<8x32xf32>
    %c0_2 = arith.constant 0 : index
    %c0_3 = arith.constant 0 : index
    %c0_4 = arith.constant 0 : index
    %4 = vector.load %arg8[%c0_2, %c0_3, %c0_4] : memref<1x8x96xf32, #tpu.memory_space<vmem>>, vector<1x8x96xf32>
    %5 = vector.shape_cast %4 : vector<1x8x96xf32> to vector<8x96xf32>
    %6 = vector.extract_strided_slice %5 {offsets = [0, 0], sizes = [1, 96], strides = [1, 1]} : vector<8x96xf32> to vector<1x96xf32>
    %7 = vector.extract_strided_slice %5 {offsets = [1, 0], sizes = [1, 32], strides = [1, 1]} : vector<8x96xf32> to vector<1x32xf32>
    %8 = vector.extract_strided_slice %5 {offsets = [2, 0], sizes = [1, 32], strides = [1, 1]} : vector<8x96xf32> to vector<1x32xf32>
    %9 = vector.extract_strided_slice %5 {offsets = [3, 0], sizes = [1, 32], strides = [1, 1]} : vector<8x96xf32> to vector<1x32xf32>
    %10 = vector.extract_strided_slice %5 {offsets = [4, 0], sizes = [1, 64], strides = [1, 1]} : vector<8x96xf32> to vector<1x64xf32>
    %11 = vector.extract_strided_slice %5 {offsets = [5, 0], sizes = [1, 32], strides = [1, 1]} : vector<8x96xf32> to vector<1x32xf32>
    %12 = vector.extract_strided_slice %5 {offsets = [6, 0], sizes = [1, 32], strides = [1, 1]} : vector<8x96xf32> to vector<1x32xf32>
    %13 = vector.extract_strided_slice %5 {offsets = [7, 0], sizes = [1, 32], strides = [1, 1]} : vector<8x96xf32> to vector<1x32xf32>
    %c0_5 = arith.constant 0 : index
    %c0_6 = arith.constant 0 : index
    %c0_7 = arith.constant 0 : index
    %14 = vector.load %arg4[%c0_5, %c0_6, %c0_7] : memref<1x32x96xf32, #tpu.memory_space<vmem>>, vector<1x32x96xf32>
    %15 = vector.shape_cast %14 : vector<1x32x96xf32> to vector<32x96xf32>
    %cst = arith.constant dense<0.000000e+00> : vector<8x96xf32>
    %16 = tpu.matmul %3, %15, %cst {dimension_numbers = #tpu.dot_dimension_numbers<[1], [0], [0], [1], [0, 0, 1, 1], [], []>} : vector<8x32xf32>, vector<32x96xf32>, vector<8x96xf32> -> vector<8x96xf32>
    %17 = vector.broadcast %6 : vector<1x96xf32> to vector<8x96xf32>
    %18 = arith.addf %16, %17 : vector<8x96xf32>
    %19 = vector.extract_strided_slice %18 {offsets = [0, 0], sizes = [8, 16], strides = [1, 1]} : vector<8x96xf32> to vector<8x16xf32>
    %c0_8 = arith.constant 0 : index
    %c0_9 = arith.constant 0 : index
    %c0_10 = arith.constant 0 : index
    %c0_11 = arith.constant 0 : index
    %20 = vector.load %arg13[%c0_8, %c0_9, %c0_10, %c0_11] : memref<3x2x8x16xf32, #tpu.memory_space<vmem>>, vector<1x1x8x16xf32>
    %21 = vector.shape_cast %20 : vector<1x1x8x16xf32> to vector<8x16xf32>
    %22 = vector.shape_cast %19 : vector<8x16xf32> to vector<1x1x8x16xf32>
    tpu.vector_store %arg13[%c0_8, %c0_9, %c0_10, %c0_11], %22 {strides = array<i32>} : memref<3x2x8x16xf32, #tpu.memory_space<vmem>>, vector<1x1x8x16xf32>,
    %23 = vector.extract_strided_slice %18 {offsets = [0, 32], sizes = [8, 16], strides = [1, 1]} : vector<8x96xf32> to vector<8x16xf32>
    %c1 = arith.constant 1 : index
    %c0_12 = arith.constant 0 : index
    %c0_13 = arith.constant 0 : index
    %c0_14 = arith.constant 0 : index
    %24 = vector.load %arg13[%c1, %c0_12, %c0_13, %c0_14] : memref<3x2x8x16xf32, #tpu.memory_space<vmem>>, vector<1x1x8x16xf32>
    %25 = vector.shape_cast %24 : vector<1x1x8x16xf32> to vector<8x16xf32>
    %26 = vector.shape_cast %23 : vector<8x16xf32> to vector<1x1x8x16xf32>
    tpu.vector_store %arg13[%c1, %c0_12, %c0_13, %c0_14], %26 {strides = array<i32>} : memref<3x2x8x16xf32, #tpu.memory_space<vmem>>, vector<1x1x8x16xf32>,
    %27 = vector.extract_strided_slice %18 {offsets = [0, 64], sizes = [8, 16], strides = [1, 1]} : vector<8x96xf32> to vector<8x16xf32>
    %c2 = arith.constant 2 : index
    %c0_15 = arith.constant 0 : index
    %c0_16 = arith.constant 0 : index
    %c0_17 = arith.constant 0 : index
    %28 = vector.load %arg13[%c2, %c0_15, %c0_16, %c0_17] : memref<3x2x8x16xf32, #tpu.memory_space<vmem>>, vector<1x1x8x16xf32>
    %29 = vector.shape_cast %28 : vector<1x1x8x16xf32> to vector<8x16xf32>
    %30 = vector.shape_cast %27 : vector<8x16xf32> to vector<1x1x8x16xf32>
    tpu.vector_store %arg13[%c2, %c0_15, %c0_16, %c0_17], %30 {strides = array<i32>} : memref<3x2x8x16xf32, #tpu.memory_space<vmem>>, vector<1x1x8x16xf32>,
    %31 = vector.extract_strided_slice %18 {offsets = [0, 16], sizes = [8, 16], strides = [1, 1]} : vector<8x96xf32> to vector<8x16xf32>
    %c0_18 = arith.constant 0 : index
    %c1_19 = arith.constant 1 : index
    %c0_20 = arith.constant 0 : index
    %c0_21 = arith.constant 0 : index
    %32 = vector.load %arg13[%c0_18, %c1_19, %c0_20, %c0_21] : memref<3x2x8x16xf32, #tpu.memory_space<vmem>>, vector<1x1x8x16xf32>
    %33 = vector.shape_cast %32 : vector<1x1x8x16xf32> to vector<8x16xf32>
    %34 = vector.shape_cast %31 : vector<8x16xf32> to vector<1x1x8x16xf32>
    tpu.vector_store %arg13[%c0_18, %c1_19, %c0_20, %c0_21], %34 {strides = array<i32>} : memref<3x2x8x16xf32, #tpu.memory_space<vmem>>, vector<1x1x8x16xf32>,
    %35 = vector.extract_strided_slice %18 {offsets = [0, 48], sizes = [8, 16], strides = [1, 1]} : vector<8x96xf32> to vector<8x16xf32>
    %c1_22 = arith.constant 1 : index
    %c1_23 = arith.constant 1 : index
    %c0_24 = arith.constant 0 : index
    %c0_25 = arith.constant 0 : index
    %36 = vector.load %arg13[%c1_22, %c1_23, %c0_24, %c0_25] : memref<3x2x8x16xf32, #tpu.memory_space<vmem>>, vector<1x1x8x16xf32>
    %37 = vector.shape_cast %36 : vector<1x1x8x16xf32> to vector<8x16xf32>
    %38 = vector.shape_cast %35 : vector<8x16xf32> to vector<1x1x8x16xf32>
    tpu.vector_store %arg13[%c1_22, %c1_23, %c0_24, %c0_25], %38 {strides = array<i32>} : memref<3x2x8x16xf32, #tpu.memory_space<vmem>>, vector<1x1x8x16xf32>,
    %39 = vector.extract_strided_slice %18 {offsets = [0, 80], sizes = [8, 16], strides = [1, 1]} : vector<8x96xf32> to vector<8x16xf32>
    %c2_26 = arith.constant 2 : index
    %c1_27 = arith.constant 1 : index
    %c0_28 = arith.constant 0 : index
    %c0_29 = arith.constant 0 : index
    %40 = vector.load %arg13[%c2_26, %c1_27, %c0_28, %c0_29] : memref<3x2x8x16xf32, #tpu.memory_space<vmem>>, vector<1x1x8x16xf32>
    %41 = vector.shape_cast %40 : vector<1x1x8x16xf32> to vector<8x16xf32>
    %42 = vector.shape_cast %39 : vector<8x16xf32> to vector<1x1x8x16xf32>
    tpu.vector_store %arg13[%c2_26, %c1_27, %c0_28, %c0_29], %42 {strides = array<i32>} : memref<3x2x8x16xf32, #tpu.memory_space<vmem>>, vector<1x1x8x16xf32>,
    %c0_30 = arith.constant 0 : index
    %c0_31 = arith.constant 0 : index
    %c0_32 = arith.constant 0 : index
    %c0_33 = arith.constant 0 : index
    %43 = vector.load %arg13[%c0_30, %c0_31, %c0_32, %c0_33] : memref<3x2x8x16xf32, #tpu.memory_space<vmem>>, vector<1x2x8x16xf32>
    %44 = vector.shape_cast %43 : vector<1x2x8x16xf32> to vector<2x8x16xf32>
    %c1_34 = arith.constant 1 : index
    %c0_35 = arith.constant 0 : index
    %c0_36 = arith.constant 0 : index
    %c0_37 = arith.constant 0 : index
    %45 = vector.load %arg13[%c1_34, %c0_35, %c0_36, %c0_37] : memref<3x2x8x16xf32, #tpu.memory_space<vmem>>, vector<1x2x8x16xf32>
    %46 = vector.shape_cast %45 : vector<1x2x8x16xf32> to vector<2x8x16xf32>
    %c2_38 = arith.constant 2 : index
    %c0_39 = arith.constant 0 : index
    %c0_40 = arith.constant 0 : index
    %c0_41 = arith.constant 0 : index
    %47 = vector.load %arg13[%c2_38, %c0_39, %c0_40, %c0_41] : memref<3x2x8x16xf32, #tpu.memory_space<vmem>>, vector<1x2x8x16xf32>
    %48 = vector.shape_cast %47 : vector<1x2x8x16xf32> to vector<2x8x16xf32>
    %c0_42 = arith.constant 0 : index
    %c0_43 = arith.constant 0 : index
    %c0_44 = arith.constant 0 : index
    %49 = vector.load %arg3[%c0_42, %c0_43, %c0_44] : memref<1x1x8xf32, #tpu.memory_space<vmem>>, vector<1x1x8xf32>
    "tpu.trace_start"() <{level = 10 : i32, message = "hqd,hkd->hqk"}> : () -> ()
    %cst_45 = arith.constant dense<0.000000e+00> : vector<2x8x8xf32>
    %50 = tpu.matmul %44, %46, %cst_45 {dimension_numbers = #tpu.dot_dimension_numbers<[2], [2], [1], [1], [0, 0, 0, 1, 1, 1], [0], [0]>} : vector<2x8x16xf32>, vector<2x8x16xf32>, vector<2x8x8xf32> -> vector<2x8x8xf32>
    "tpu.trace_stop"() : () -> ()
    %cst_46 = arith.constant 2.500000e-01 : f32
    %51 = vector.broadcast %cst_46 : f32 to vector<2x8x8xf32>
    %52 = arith.mulf %50, %51 : vector<2x8x8xf32>
    %53 = vector.broadcast %49 : vector<1x1x8xf32> to vector<2x8x8xf32>
    %54 = arith.addf %52, %53 : vector<2x8x8xf32>
    %cst_47 = arith.constant dense<0xFF800000> : vector<2x8xf32>
    %55 = vector.multi_reduction <maximumf>, %54, %cst_47 [2] : vector<2x8x8xf32> to vector<2x8xf32>
    %56 = vector.shape_cast %55 : vector<2x8xf32> to vector<2x8x1xf32>
    %57 = vector.broadcast %56 : vector<2x8x1xf32> to vector<2x8x8xf32>
    %58 = arith.subf %54, %57 : vector<2x8x8xf32>
    %59 = math.exp %58 : vector<2x8x8xf32>
    %cst_48 = arith.constant dense<0.000000e+00> : vector<2x8xf32>
    %60 = vector.multi_reduction <add>, %59, %cst_48 [2] : vector<2x8x8xf32> to vector<2x8xf32>
    %61 = vector.shape_cast %60 : vector<2x8xf32> to vector<2x8x1xf32>
    %62 = tpu.reciprocal %61 {approx = true} : vector<2x8x1xf32> -> vector<2x8x1xf32>
    %63 = vector.broadcast %62 : vector<2x8x1xf32> to vector<2x8x8xf32>
    %64 = arith.mulf %59, %63 : vector<2x8x8xf32>
    "tpu.trace_start"() <{level = 10 : i32, message = "hqk,hkd->hqd"}> : () -> ()
    %cst_49 = arith.constant dense<0.000000e+00> : vector<2x8x16xf32>
    %65 = tpu.matmul %64, %48, %cst_49 {dimension_numbers = #tpu.dot_dimension_numbers<[2], [1], [1], [2], [0, 0, 0, 1, 1, 2], [0], [0]>} : vector<2x8x8xf32>, vector<2x8x16xf32>, vector<2x8x16xf32> -> vector<2x8x16xf32>
    "tpu.trace_stop"() : () -> ()
    %66 = vector.extract_strided_slice %65 {offsets = [0, 0, 0], sizes = [1, 8, 16], strides = [1, 1, 1]} : vector<2x8x16xf32> to vector<1x8x16xf32>
    %67 = vector.shape_cast %66 : vector<1x8x16xf32> to vector<8x16xf32>
    %c0_50 = arith.constant 0 : index
    %c0_51 = arith.constant 0 : index
    %68 = vector.load %arg14[%c0_50, %c0_51] : memref<8x32xf32, #tpu.memory_space<vmem>>, vector<8x16xf32>
    tpu.vector_store %arg14[%c0_50, %c0_51], %67 {strides = array<i32>} : memref<8x32xf32, #tpu.memory_space<vmem>>, vector<8x16xf32>,
    %69 = vector.extract_strided_slice %65 {offsets = [1, 0, 0], sizes = [1, 8, 16], strides = [1, 1, 1]} : vector<2x8x16xf32> to vector<1x8x16xf32>
    %70 = vector.shape_cast %69 : vector<1x8x16xf32> to vector<8x16xf32>
    %c0_52 = arith.constant 0 : index
    %c16 = arith.constant 16 : index
    %71 = vector.load %arg14[%c0_52, %c16] : memref<8x32xf32, #tpu.memory_space<vmem>>, vector<8x16xf32>
    tpu.vector_store %arg14[%c0_52, %c16], %70 {strides = array<i32>} : memref<8x32xf32, #tpu.memory_space<vmem>>, vector<8x16xf32>,
    %c0_53 = arith.constant 0 : index
    %c0_54 = arith.constant 0 : index
    %72 = vector.load %arg14[%c0_53, %c0_54] : memref<8x32xf32, #tpu.memory_space<vmem>>, vector<8x32xf32>
    %c0_55 = arith.constant 0 : index
    %c0_56 = arith.constant 0 : index
    %c0_57 = arith.constant 0 : index
    %73 = vector.load %arg5[%c0_55, %c0_56, %c0_57] : memref<1x32x32xf32, #tpu.memory_space<vmem>>, vector<1x32x32xf32>
    %74 = vector.shape_cast %73 : vector<1x32x32xf32> to vector<32x32xf32>
    %cst_58 = arith.constant dense<0.000000e+00> : vector<8x32xf32>
    %75 = tpu.matmul %72, %74, %cst_58 {dimension_numbers = #tpu.dot_dimension_numbers<[1], [0], [0], [1], [0, 0, 1, 1], [], []>} : vector<8x32xf32>, vector<32x32xf32>, vector<8x32xf32> -> vector<8x32xf32>
    %76 = vector.broadcast %7 : vector<1x32xf32> to vector<8x32xf32>
    %77 = arith.addf %75, %76 : vector<8x32xf32>
    %78 = arith.addf %3, %77 : vector<8x32xf32>
    %cst_59 = arith.constant dense<0.000000e+00> : vector<8xf32>
    %79 = vector.multi_reduction <add>, %78, %cst_59 [1] : vector<8x32xf32> to vector<8xf32>
    %80 = vector.shape_cast %79 : vector<8xf32> to vector<8x1xf32>
    %cst_60 = arith.constant 3.200000e+01 : f32
    %81 = vector.broadcast %cst_60 : f32 to vector<8x1xf32>
    %82 = arith.divf %80, %81 : vector<8x1xf32>
    %83 = vector.broadcast %82 : vector<8x1xf32> to vector<8x32xf32>
    %84 = arith.subf %78, %83 : vector<8x32xf32>
    %85 = arith.mulf %84, %84 : vector<8x32xf32>
    %cst_61 = arith.constant dense<0.000000e+00> : vector<8xf32>
    %86 = vector.multi_reduction <add>, %85, %cst_61 [1] : vector<8x32xf32> to vector<8xf32>
    %87 = vector.shape_cast %86 : vector<8xf32> to vector<8x1xf32>
    %cst_62 = arith.constant 3.200000e+01 : f32
    %88 = vector.broadcast %cst_62 : f32 to vector<8x1xf32>
    %89 = arith.divf %87, %88 : vector<8x1xf32>
    %90 = vector.broadcast %82 : vector<8x1xf32> to vector<8x32xf32>
    %91 = arith.subf %78, %90 : vector<8x32xf32>
    %cst_63 = arith.constant 9.99999996E-13 : f32
    %92 = vector.broadcast %cst_63 : f32 to vector<8x1xf32>
    %93 = arith.addf %89, %92 : vector<8x1xf32>
    %94 = math.rsqrt %93 : vector<8x1xf32>
    %95 = vector.broadcast %94 : vector<8x1xf32> to vector<8x32xf32>
    %96 = arith.mulf %91, %95 : vector<8x32xf32>
    %97 = vector.broadcast %8 : vector<1x32xf32> to vector<8x32xf32>
    %98 = arith.mulf %96, %97 : vector<8x32xf32>
    %99 = vector.broadcast %9 : vector<1x32xf32> to vector<8x32xf32>
    %100 = arith.addf %98, %99 : vector<8x32xf32>
    %c0_64 = arith.constant 0 : index
    %c0_65 = arith.constant 0 : index
    %c0_66 = arith.constant 0 : index
    %101 = vector.load %arg6[%c0_64, %c0_65, %c0_66] : memref<1x32x64xf32, #tpu.memory_space<vmem>>, vector<1x32x64xf32>
    %102 = vector.shape_cast %101 : vector<1x32x64xf32> to vector<32x64xf32>
    %cst_67 = arith.constant dense<0.000000e+00> : vector<8x64xf32>
    %103 = tpu.matmul %100, %102, %cst_67 {dimension_numbers = #tpu.dot_dimension_numbers<[1], [0], [0], [1], [0, 0, 1, 1], [], []>} : vector<8x32xf32>, vector<32x64xf32>, vector<8x64xf32> -> vector<8x64xf32>
    %104 = vector.broadcast %10 : vector<1x64xf32> to vector<8x64xf32>
    %105 = arith.addf %103, %104 : vector<8x64xf32>
    %cst_68 = arith.constant 5.000000e-01 : f32
    %106 = vector.broadcast %cst_68 : f32 to vector<8x64xf32>
    %107 = arith.mulf %106, %105 : vector<8x64xf32>
    %cst_69 = arith.constant 4.471500e-02 : f32
    %108 = vector.broadcast %cst_69 : f32 to vector<8x64xf32>
    %109 = arith.mulf %108, %105 : vector<8x64xf32>
    %110 = arith.mulf %109, %105 : vector<8x64xf32>
    %111 = arith.mulf %110, %105 : vector<8x64xf32>
    %112 = arith.addf %105, %111 : vector<8x64xf32>
    %cst_70 = arith.constant 0.797884583 : f32
    %113 = vector.broadcast %cst_70 : f32 to vector<8x64xf32>
    %114 = arith.mulf %113, %112 : vector<8x64xf32>
    %115 = math.tanh %114 : vector<8x64xf32>
    %cst_71 = arith.constant 1.000000e+00 : f32
    %116 = vector.broadcast %cst_71 : f32 to vector<8x64xf32>
    %117 = arith.addf %116, %115 : vector<8x64xf32>
    %118 = arith.mulf %107, %117 : vector<8x64xf32>
    %c0_72 = arith.constant 0 : index
    %c0_73 = arith.constant 0 : index
    %c0_74 = arith.constant 0 : index
    %119 = vector.load %arg7[%c0_72, %c0_73, %c0_74] : memref<1x64x32xf32, #tpu.memory_space<vmem>>, vector<1x64x32xf32>
    %120 = vector.shape_cast %119 : vector<1x64x32xf32> to vector<64x32xf32>
    %cst_75 = arith.constant dense<0.000000e+00> : vector<8x32xf32>
    %121 = tpu.matmul %118, %120, %cst_75 {dimension_numbers = #tpu.dot_dimension_numbers<[1], [0], [0], [1], [0, 0, 1, 1], [], []>} : vector<8x64xf32>, vector<64x32xf32>, vector<8x32xf32> -> vector<8x32xf32>
    %122 = vector.broadcast %11 : vector<1x32xf32> to vector<8x32xf32>
    %123 = arith.addf %121, %122 : vector<8x32xf32>
    %124 = arith.addf %100, %123 : vector<8x32xf32>
    %cst_76 = arith.constant dense<0.000000e+00> : vector<8xf32>
    %125 = vector.multi_reduction <add>, %124, %cst_76 [1] : vector<8x32xf32> to vector<8xf32>
    %126 = vector.shape_cast %125 : vector<8xf32> to vector<8x1xf32>
    %cst_77 = arith.constant 3.200000e+01 : f32
    %127 = vector.broadcast %cst_77 : f32 to vector<8x1xf32>
    %128 = arith.divf %126, %127 : vector<8x1xf32>
    %129 = vector.broadcast %128 : vector<8x1xf32> to vector<8x32xf32>
    %130 = arith.subf %124, %129 : vector<8x32xf32>
    %131 = arith.mulf %130, %130 : vector<8x32xf32>
    %cst_78 = arith.constant dense<0.000000e+00> : vector<8xf32>
    %132 = vector.multi_reduction <add>, %131, %cst_78 [1] : vector<8x32xf32> to vector<8xf32>
    %133 = vector.shape_cast %132 : vector<8xf32> to vector<8x1xf32>
    %cst_79 = arith.constant 3.200000e+01 : f32
    %134 = vector.broadcast %cst_79 : f32 to vector<8x1xf32>
    %135 = arith.divf %133, %134 : vector<8x1xf32>
    %136 = vector.broadcast %128 : vector<8x1xf32> to vector<8x32xf32>
    %137 = arith.subf %124, %136 : vector<8x32xf32>
    %cst_80 = arith.constant 9.99999996E-13 : f32
    %138 = vector.broadcast %cst_80 : f32 to vector<8x1xf32>
    %139 = arith.addf %135, %138 : vector<8x1xf32>
    %140 = math.rsqrt %139 : vector<8x1xf32>
    %141 = vector.broadcast %140 : vector<8x1xf32> to vector<8x32xf32>
    %142 = arith.mulf %137, %141 : vector<8x32xf32>
    %143 = vector.broadcast %12 : vector<1x32xf32> to vector<8x32xf32>
    %144 = arith.mulf %142, %143 : vector<8x32xf32>
    %145 = vector.broadcast %13 : vector<1x32xf32> to vector<8x32xf32>
    %146 = arith.addf %144, %145 : vector<8x32xf32>
    %c0_81 = arith.constant 0 : index
    %c0_82 = arith.constant 0 : index
    %147 = vector.load %arg12[%c0_81, %c0_82] : memref<8x32xf32, #tpu.memory_space<vmem>>, vector<8x32xf32>
    tpu.vector_store %arg12[%c0_81, %c0_82], %146 {strides = array<i32>} : memref<8x32xf32, #tpu.memory_space<vmem>>, vector<8x32xf32>,
    %c1_i32 = arith.constant 1 : i32
    %148 = arith.cmpi eq, %arg1, %c1_i32 : i32
    %149 = arith.extui %148 : i1 to i32
    %c0_i32_83 = arith.constant 0 : i32
    %150 = arith.cmpi ne, %149, %c0_i32_83 : i32
    scf.if %150 {
      %c0_84 = arith.constant 0 : index
      %c0_85 = arith.constant 0 : index
      %151 = vector.load %arg9[%c0_84, %c0_85] : memref<32x128xf32, #tpu.memory_space<vmem>>, vector<32x128xf32>
      %cst_86 = arith.constant dense<0.000000e+00> : vector<8x128xf32>
      %152 = tpu.matmul %146, %151, %cst_86 {dimension_numbers = #tpu.dot_dimension_numbers<[1], [0], [0], [1], [0, 0, 1, 1], [], []>} : vector<8x32xf32>, vector<32x128xf32>, vector<8x128xf32> -> vector<8x128xf32>
      %c0_87 = arith.constant 0 : index
      %c0_88 = arith.constant 0 : index
      %153 = vector.load %arg10[%c0_87, %c0_88] : memref<1x128xf32, #tpu.memory_space<vmem>>, vector<1x128xf32>
      %154 = vector.broadcast %153 : vector<1x128xf32> to vector<8x128xf32>
      %155 = arith.addf %152, %154 : vector<8x128xf32>
      %c0_89 = arith.constant 0 : index
      %c0_90 = arith.constant 0 : index
      %c0_91 = arith.constant 0 : index
      %156 = vector.load %arg11[%c0_89, %c0_90, %c0_91] : memref<1x8x128xf32, #tpu.memory_space<vmem>>, vector<1x8x128xf32>
      %157 = vector.shape_cast %156 : vector<1x8x128xf32> to vector<8x128xf32>
      %158 = vector.shape_cast %155 : vector<8x128xf32> to vector<1x8x128xf32>
      tpu.vector_store %arg11[%c0_89, %c0_90, %c0_91], %158 {strides = array<i32>} : memref<1x8x128xf32, #tpu.memory_space<vmem>>, vector<1x8x128xf32>,
    } else {
    }
    return
  }
  func.func @transform_0(%arg0: i32, %arg1: i32) -> (i32, i32, i32) {
    %c0_i32 = arith.constant 0 : i32
    %c0_i32_0 = arith.constant 0 : i32
    %c0_i32_1 = arith.constant 0 : i32
    return %arg0, %c0_i32, %c0_i32_0 : i32, i32, i32
  }
  func.func @transform_1(%arg0: i32, %arg1: i32) -> (i32, i32, i32) {
    %c0_i32 = arith.constant 0 : i32
    %c0_i32_0 = arith.constant 0 : i32
    %c0_i32_1 = arith.constant 0 : i32
    return %arg0, %c0_i32, %c0_i32_0 : i32, i32, i32
  }
  func.func @transform_2(%arg0: i32, %arg1: i32) -> (i32, i32, i32) {
    %c0_i32 = arith.constant 0 : i32
    %c0_i32_0 = arith.constant 0 : i32
    %c0_i32_1 = arith.constant 0 : i32
    return %arg1, %c0_i32, %c0_i32_0 : i32, i32, i32
  }
  func.func @transform_3(%arg0: i32, %arg1: i32) -> (i32, i32, i32) {
    %c0_i32 = arith.constant 0 : i32
    %c0_i32_0 = arith.constant 0 : i32
    %c0_i32_1 = arith.constant 0 : i32
    return %arg1, %c0_i32, %c0_i32_0 : i32, i32, i32
  }
  func.func @transform_4(%arg0: i32, %arg1: i32) -> (i32, i32, i32) {
    %c0_i32 = arith.constant 0 : i32
    %c0_i32_0 = arith.constant 0 : i32
    %c0_i32_1 = arith.constant 0 : i32
    return %arg1, %c0_i32, %c0_i32_0 : i32, i32, i32
  }
  func.func @transform_5(%arg0: i32, %arg1: i32) -> (i32, i32, i32) {
    %c0_i32 = arith.constant 0 : i32
    %c0_i32_0 = arith.constant 0 : i32
    %c0_i32_1 = arith.constant 0 : i32
    return %arg1, %c0_i32, %c0_i32_0 : i32, i32, i32
  }
  func.func @transform_6(%arg0: i32, %arg1: i32) -> (i32, i32, i32) {
    %c0_i32 = arith.constant 0 : i32
    %c0_i32_0 = arith.constant 0 : i32
    %c0_i32_1 = arith.constant 0 : i32
    return %arg1, %c0_i32, %c0_i32_0 : i32, i32, i32
  }
  func.func @transform_7(%arg0: i32, %arg1: i32) -> (i32, i32) {
    %c0_i32 = arith.constant 0 : i32
    %c0_i32_0 = arith.constant 0 : i32
    %c0_i32_1 = arith.constant 0 : i32
    return %c0_i32, %c0_i32_0 : i32, i32
  }
  func.func @transform_8(%arg0: i32, %arg1: i32) -> (i32, i32) {
    %c0_i32 = arith.constant 0 : i32
    %c0_i32_0 = arith.constant 0 : i32
    %c0_i32_1 = arith.constant 0 : i32
    return %c0_i32, %c0_i32_0 : i32, i32
  }
  func.func @transform_9(%arg0: i32, %arg1: i32) -> (i32, i32, i32) {
    %c0_i32 = arith.constant 0 : i32
    %c0_i32_0 = arith.constant 0 : i32
    %c0_i32_1 = arith.constant 0 : i32
    return %arg0, %c0_i32, %c0_i32_0 : i32, i32, i32
  }
}

</mosaic_0001>

<bundles_post_ra>
// kernel: bert_forward.1
= control target key start
LH: loop header
LB: loop body
LE: loop exit
PB: predicated region body
PF: predicated region fallthrough
CT: control target
= control target key end

     0   :  { %s2270_s0 = inlined_call_operand.vmem [shape: f32[2,8,32], index: 0, kind: input, shape index: {}]   ;;  %s2271_s1 = inlined_call_operand.vmem [shape: f32[2,1,8], index: 1, kind: input, shape index: {}]   ;;  %s2272_s2 = inlined_call_operand.vmem [shape: f32[2,32,96], index: 2, kind: input, shape index: {}]   ;;  %s2273_s3 = inlined_call_operand.hbm [shape: f32[2,32,32], index: 3, kind: input, shape index: {}]   ;;  %s2274_s4 = inlined_call_operand.hbm [shape: f32[2,32,64], index: 4, kind: input, shape index: {}]   ;;  %s2275_s5 = inlined_call_operand.vmem [shape: f32[2,64,32], index: 5, kind: input, shape index: {}]   ;;  %s2276_s6 = inlined_call_operand.vmem [shape: f32[2,8,96], index: 6, kind: input, shape index: {}]   ;;  %s2277_s7 = inlined_call_operand.vmem [shape: f32[32,128], index: 7, kind: input, shape index: {}]   ;;  %s2278_s8 = inlined_call_operand.vmem [shape: f32[1,128], index: 8, kind: input, shape index: {}]   ;;  %s2279_s9 = inlined_call_operand.vmem [shape: f32[2,8,128], index: 9, kind: output, shape index: {}]  }
   0x1   :  { %2287 = sst [smem:[#allocation19_spill]] %s2273_s3 }
   0x2   :  { %2288 = sst [smem:[#allocation20_spill]] %s2274_s4 }
   0x3   :  { %14 = vsyncpa [#allocation6], 0 }
   0x4   :  { %16 = vsyncpa [#allocation6 + $0x1], 0 }
   0x5   :  { %17 = vsyncpa [#allocation8], 0 }
   0x6   :  { %19 = vsyncpa [#allocation8 + $0x1], 0  ;;  %s1963_s30 = smov 0   ;;  %s1965_s10 = smov 0  }
   0x7   :  { %s1967_s11 = smov 0   ;;  %s1969_s12 = smov 0  }
   0x8   :  { %s1971_s13 = smov 0   ;;  %s1973_s14 = smov 0  }
   0x9   :  { %s1975_s15 = smov 0   ;;  %s1977_s16 = smov 0  }
   0xa LB: > { %2289 = sst [smem:[#allocation11_spill]] %s1873_s10  ;;  %s1508_s17 = sadd.s32 4294967295, %s1897_s16   ;;  %s1897_s16 = sphi %s1977_s16, %s25_s16   ;;  %s1893_s15 = sphi %s1975_s15, %s2311_s15   ;;  %s1889_s14 = sphi %s1973_s14, %s2310_s14   ;;  %s1885_s13 = sphi %s1971_s13, %s2309_s13   ;;  %s1881_s12 = sphi %s1969_s12, %s2308_s12   ;;  %s1877_s11 = sphi %s1967_s11, %s2307_s11   ;;  %s1873_s10 = sphi %s1965_s10, %s2306_s10   ;;  %s1869_s30 = sphi %s1963_s30, %s2305_s30  }
   0xb   : > { %2290 = sst [smem:[#allocation12_spill]] %s1877_s11  ;;  %s34_s18 = sadd.s32 1, %s1889_s14 }
   0xc   : > { %2291 = sst [smem:[#allocation13_spill]] %s1889_s14  ;;  %p35_p0 = scmp.ge.s32.totalorder %s34_s18, 2 }
   0xd   : > { %2292 = sst [smem:[#allocation14_spill]] %s1893_s15  ;;  %s37_s19 = sadd.s32 1, %s1893_s15 }
   0xe   : > { %2293 = sst [smem:[#allocation15_spill]] %s1897_s16  ;;  %s122_s20 = sadd.s32 1, %s1877_s11 }
   0xf   : > { %p129_p1 = scmp.ne.s32.totalorder %s1877_s11, %s1873_s10  ;;  %s2313_s18 = smov (%p35_p0, %s34_s18), 0 }
  0x10   : > { %2294 = sst [smem:[#allocation16_spill]] %s2313_s18  ;;  %s2315_s19 = smov (!%p35_p0, %s37_s19), %s1893_s15 }
  0x11   : > { %s119_s21 = ssub.s32 %s1889_s14, %s2313_s18  ;;  %p130_p2 = scmp.eq.s32.totalorder %s1897_s16, 0 }
  0x12   : > { %p39_p3 = scmp.ge.s32.totalorder %s2315_s19, 2  ;;  %p120_p4 = scmp.eq.s32.totalorder %s119_s21, 0 }
  0x13   : > { %p2013_p5 = por %p130_p2, %p129_p1  ;;  %p135_p6 = scmp.ne.s32.totalorder %s1873_s10, %s1869_s30 }
  0x14   : > { %s2317_s19 = smov (%p39_p3, %s2315_s19), 0  ;;  %p136_p7 = scmp.eq.s32.totalorder %s1508_s17, 0 }
  0x15   : > { %2296 = sst [smem:[#allocation17_spill]] %s2317_s19  ;;  %p1680_p8 = scmp.lt.s32.totalorder %s1897_s16, 4 }
  0x16   : > { %s2021_s23 = scalar_select %p120_p4, %s1877_s11, %s122_s20  }
  0x17   : > { %s2025_s24 = sand.u32 1, %s1877_s11   ;;  %p2027_p9 = por %p136_p7, %p135_p6 }
  0x18   : > { %2297 = sst [smem:[#allocation18_spill]] %s2021_s23  ;;  %s2281_s26 = sshll.u32 %s2025_s24, 5 }
  0x19   : > { %s1545_s27 = sshll.u32 %s1889_s14, 9  ;;  %s2299_s3 = sld [smem:[#allocation19_spill]] }
  0x1a   : > { %s336_s20 = scalar_lea.vmem [#allocation5], %s2281_s26  ;;  %p2040_p10 = pnand %p1680_p8, %p2013_p5 }
  0x1b   : > { %s343_s21 = sshll.u32 %s336_s20, 4  ;;  %s333_s19 = scalar_lea.sflag [#allocation6], %s2025_s24  ;;  %s344_s21 = int_to_ptr.vmem [resolvable:$true] %s343_s21 }
  0x1c   : > { %p1773_p11 = pneg %p2040_p10  ;;  %s1784_s18 = scalar_lea.vmem %s344_s21, 512 }
  0x1d   : > { %p1785_p12 = scmp.ne.s32.totalorder %s344_s21, %s1784_s18  ;;  %s1899_s28 = smov [#allocation5]  }
  0x1e   : > { %s1789_s29 = sshll.u32 %s1899_s28, 4  ;;  %s1790_s29 = int_to_ptr.vmem [resolvable:$false] %s1789_s29 }
  0x1f   : > { %s342_s30 = scalar_lea.hbm %s2299_s3, %s1545_s27  ;;  %p1787_p13 = pnand %p1785_p12, %p1773_p11 }
  0x20   : > { %s1791_s22 = scalar_lea.vmem %s1790_s29, 1024  ;;  %p1792_p1 = scmp.lt.s32.totalorder %s344_s21, %s1790_s29 }
  0x21   : > { %p1788_p0 = pneg %p1787_p13  ;;  %p1793_p2 = scmp.lt.s32.totalorder %s1791_s22, %s1784_s18 }
  0x23   : > { %p1794_p3 = por %p1793_p2, %p1792_p1 }
  0x25   : > { %p1795_p4 = pnand %p1794_p3, %p1788_p0 }
  0x27   : > { %1798 = shalt.err (!%p1795_p4)
}
  0x28   : > { %s1900_s20 = smov 128   ;;  %s1901_s26 = smov 8  }
  0x29   : > { %1676 = dma.hbm_to_vmem [thread:$0]  (!%p2040_p10), %s342_s30, 512, %s344_s21, %s333_s19, %s1900_s20, %s1900_s20, %s1901_s26  }
  0x2a   : > { %p1518_p5 = scmp.ge.s32.totalorder %s1897_s16, 1  ;;  %p387_p6 = scmp.lt.s32.totalorder %s1897_s16, 5 }
  0x2b   : > { %s2302_s4 = sld [smem:[#allocation20_spill]]  ;;  %s2303_s3 = sshll.u32 %s2025_s24, 5 }
  0x2c   : > { %p2054_p7 = pnand %p1518_p5, %p387_p6  ;;  %s357_s15 = scalar_lea.vmem [#allocation7], %s2303_s3 }
  0x2d   : > { %s364_s14 = sshll.u32 %s357_s15, 4  ;;  %s354_s23 = scalar_lea.sflag [#allocation8], %s2025_s24  ;;  %s365_s14 = int_to_ptr.vmem [resolvable:$true] %s364_s14 }
  0x2e   : > { %s1812_s11 = scalar_lea.vmem %s365_s14, 512  ;;  %s1902_s19 = smov [#allocation7]  }
  0x2f   : > { %p1813_p8 = scmp.ne.s32.totalorder %s365_s14, %s1812_s11  ;;  %s1817_s30 = sshll.u32 %s1902_s19, 4  ;;  %s1818_s30 = int_to_ptr.vmem [resolvable:$false] %s1817_s30 }
  0x30   : > { %s1819_s21 = scalar_lea.vmem %s1818_s30, 1024  ;;  %p1820_p0 = scmp.lt.s32.totalorder %s365_s14, %s1818_s30 }
  0x31   : > { %s363_s22 = scalar_lea.hbm %s2302_s4, %s1545_s27  ;;  %p1815_p12 = pnand %p1813_p8, %p1773_p11 }
  0x32   : > { %p1821_p1 = scmp.lt.s32.totalorder %s1819_s21, %s1812_s11 }
  0x33   : > { %p1816_p13 = pneg %p1815_p12 }
  0x34   : > { %p1822_p2 = por %p1821_p1, %p1820_p0 }
  0x36   : > { %p1823_p3 = pnand %p1822_p2, %p1816_p13 }
  0x38   : > { %1826 = shalt.err (!%p1823_p3)
}
  0x39   : > { %1679 = dma.hbm_to_vmem [thread:$0]  (!%p2040_p10), %s363_s22, 512, %s365_s14, %s354_s23, %s1900_s20, %s1900_s20, %s1901_s26  }
  0x3a   : > { %391 = sbr.rel (%p2054_p7) target bundleno = 2680 (0xa78), region = 56  ;;  %s393_s3 = sand.u32 (!%p2054_p7), 1, %s1873_s10  }
  0x3b   : > { %s1519_s15 = sshll.u32 (!%p2054_p7), %s393_s3, 5  ;;  %s394_s24 = scalar_lea.sflag (!%p2054_p7), [#allocation6], %s393_s3 }
  0x3c   : > { %s2072_s27 = scalar_lea.vmem (!%p2054_p7), [#allocation5], %s1519_s15 }
  0x3f   : > { %1860 = dma.done.wait (%p2027_p9), %s394_s24, 512  }
  0x40   : > { %1862 = vsyncadd (%p2027_p9), %s394_s24, 4294966784  ;;  %s403_s11 = scalar_lea.sflag [#allocation8], %s393_s3  ;;  %s2078_s18 = scalar_lea.vmem [#allocation7], %s1519_s15 }
  0x41   : > { %1864 = dma.done.wait (%p2027_p9), %s403_s11, 512  }
  0x42   : > { %1866 = vsyncadd (%p2027_p9), %s403_s11, 4294966784  ;;  %p466_p10 = scmp.lt.s32.totalorder %s1885_s13, 1  ;;  %p473_p11 = scmp.lt.s32.totalorder %s1881_s12, 1 }
  0x43   : > { %p1528_p9 = scmp.ne.s32.totalorder %s1881_s12, 0 }
  0x44   : > { %s2319_s13 = smov (!%p466_p10, %s1885_s13), 1 }
  0x45   : > { %s474_s14 = scalar_select %p473_p11, %s1881_s12, 1 }
  0x46   : > { %s1521_s23 = sshll.u32 %s2319_s13, 3  ;;  %s472_s20 = scalar_lea.vmem %s2271_s1, %s2319_s13 }
  0x47   : > { %s469_s25 = scalar_lea.vmem %s2270_s0, %s1521_s23  ;;  %s1547_s22 = sshll.u32 %s474_s14, 5 }
  0x48   : > { %s477_s21 = scalar_lea.vmem %s2272_s2, %s1547_s22  ;;  %s1548_s3 = sshll.u32 %s474_s14, 6 }
  0x49   : > { %s2104_s11 = scalar_lea.vmem %s2275_s5, %s1548_s3  ;;  %s1526_s4 = sshll.u32 %s474_s14, 3 }
  0x4a   : > { %s2109_s26 = scalar_lea.vmem %s2276_s6, %s1526_s4  ;;  %s2114_s29 = scalar_lea.vmem %s2279_s9, %s1521_s23 }
  0x4b   : > { %494 = sbr.rel (%p1528_p9) target bundleno = 82 (0x52), region = 68 }
  0x50   : > { %v495_v0 = vld [vmem:[%s469_s25] sm:$0xff]  ;;  %vm496_vm0 = vcmask 261120  }
  0x51   : > { %497 = vst.msk [vmem:[#allocation2] sm:$0xff] %vm496_vm0, %v495_v0 }
  0x52 PF: > { %v503_v1 = vld [vmem:[%s477_s21 + $0x18] sm:$0xff]  ;;  %v1903_v2 = vmov 0.0   ;;  %v502_v3 = vld [vmem:[%s477_s21 + $0x10] sm:$0xff]  ;;  %vm1904_vm1 = vmmov 0   ;;  %v501_v4 = vld [vmem:[%s477_s21 + $0x8] sm:$0xff]  ;;  %vm508_vm2 = vcmask 261120   ;;  %v504_v7 = vlaneseq }
  0x53   : > { %1586 = vmatprep.subr.mxu1 %v1903_v2  ;;  %1594 = vmatprep.mubr.msk.f32.mxu1 %vm1904_vm1, %v1903_v2  ;;  %v500_v5 = vld [vmem:[%s477_s21] sm:$0xff]  ;;  %vm582_vm3 = vcmask 130048   ;;  %s1905_s4 = smov 112   ;;  %s1906_s10 = smov 96   ;;  %vm779_vm4 = vcmask 64512   ;;  %v959_v53 = vld [vmem:[%s2072_s27 + $0x18] sm:$0xff] }
  0x54   : > { %1587 = vmatpush3.msra.mxu1 %v503_v1  ;;  %1607 = vmatprep.subr.mxu0 %v1903_v2  ;;  %v2133_v8 = vshrl.u32 %v504_v7, 7  ;;  %v2137_v10 = vld [vmem:[%s2109_s26] sm:$0xff]  ;;  %s1907_s16 = smov 80   ;;  %s1908_s25 = smov 48   ;;  %v958_v54 = vld [vmem:[%s2072_s27 + $0x10] sm:$0xff]  ;;  %v957_v55 = vld [vmem:[%s2072_s27 + $0x8] sm:$0xff] }
  0x55   : > { %1588 = vmatprep.subr.mxu1 %v1903_v2  ;;  %1609 = vmatprep.mubr.msk.f32.mxu0 %vm1904_vm1, %v1903_v2  ;;  %v1534_v23 = vld [vmem:[%s472_s20] ss:$0 sm:$0xff]  ;;  %s1909_s13 = smov 64   ;;  %s1910_s20 = smov 16   ;;  %vm953_vm5 = vcmask 261248   ;;  %vm1164_vm6 = vcmask 523264  }
  0x56   : > { %1589 = vmatpush3.msra.mxu1 %v502_v3  ;;  %v506_v9 = vsub.s32 0, %v2133_v8  ;;  %v956_v56 = vld [vmem:[%s2072_s27] sm:$0xff]  ;;  %v962_v63 = vsub.s32 1, %v2133_v8  ;;  %p1540_p4 = scmp.ne.s32.totalorder %s1881_s12, 1 }
  0x57   : > { %1590 = vmatprep.subr.mxu1 %v1903_v2 }
  0x58   : > { %1591 = vmatpush3.msra.mxu1 %v501_v4  ;;  %v2125_v6 = vld [vmem:[#allocation2] sm:$0xff]  ;;  %v507_v11 = vrot.slane %v2137_v10, %v506_v9  ;;  %v963_v0 = vrot.slane %v2137_v10, %v962_v63 }
  0x59   : > { %1592 = vmatprep.subr.mxu1 %v1903_v2 }
  0x5a   : > { %1593 = vmatpush3.msra.mxu1 %v500_v5 }
  0x5b   : > { %1595 = vmatmul.mubr.msk.f32.vlgmr.msra.gmra.mxu1 %vm508_vm2, %v2125_v6  ;;  %1597 = vmatprep.subr.mxu1 %v1903_v2 }
  0x5c   : > { %1599 = vmatprep.mubr.msk.f32.mxu1 %vm1904_vm1, %v1903_v2 }
 0x11b   : > { %v578_v12 = vpop.f32.mrf.mxu1 }
 0x11c   : > { %v579_v13 = vadd.f32 %v578_v12, %v507_v11 }
 0x11d   : > { %v1596_v14 = vpop.f32.mrf.mxu1 }
 0x11e   : > { %583 = vst.msk [vmem:[#allocation3] sm:$0xff] %vm582_vm3, %v579_v13  ;;  %595 = vrot.lane.b32.xlu1 %v579_v13, %s1905_s4  ;;  %585 = vrot.lane.b32.xlu0 %v579_v13, %s1906_s10 }
 0x122   : > { %600 = vrot.lane.b32.xlu0 %v579_v13, %s1907_s16 }
 0x125   : > { %v610_v19 = vld [vmem:[#allocation3] sm:$0xff] }
 0x190   : > { %v596_v15 = vpop.permute.xlu1 %595  ;;  %v586_v16 = vpop.permute.xlu0 %585 }
 0x191   : > { %599 = vst.msk [vmem:[#allocation3 + $0x8] sm:$0xff] %vm582_vm3, %v596_v15  ;;  %589 = vst.msk [vmem:[#allocation3 + $0x10] sm:$0xff] %vm582_vm3, %v586_v16  ;;  %v1065_v15 = vld [vmem:[%s2078_s18 + $0x18] sm:$0xff]  ;;  %v1064_v16 = vld [vmem:[%s2078_s18 + $0x10] sm:$0xff] }
 0x194   : > { %v601_v17 = vpop.permute.xlu0 %600 }
 0x195   : > { %604 = vst.msk [vmem:[#allocation3 + $0x18] sm:$0xff] %vm582_vm3, %v601_v17  ;;  %v1063_v17 = vld [vmem:[%s2078_s18 + $0x8] sm:$0xff] }
 0x198   : > { %v612_v18 = vld [vmem:[#allocation3 + $0x10] sm:$0xff]  ;;  %v611_v21 = vld [vmem:[#allocation3 + $0x8] sm:$0xff] }
 0x199   : > { %1598 = vmatpush3.xpose.msk.msra.mxu1 %vm582_vm3, %v612_v18 }
 0x19a   : > { %1602 = vmatprep.subr.mxu1 %v1903_v2 }
 0x19c   : > { %1600 = vmatmul.mubr.msk.f32.vlgmr.msra.gmra.mxu1 %vm582_vm3, %v610_v19  ;;  %v613_v20 = vld [vmem:[#allocation3 + $0x18] sm:$0xff] }
 0x19d   : > { %1603 = vmatpush3.xpose.msk.msra.mxu1 %vm582_vm3, %v613_v20  ;;  %1604 = vmatprep.mubr.msk.f32.mxu1 %vm1904_vm1, %v1903_v2 }
 0x19e   : > { %1612 = vmatprep.subr.mxu1 %v1903_v2 }
 0x1a0   : > { %1605 = vmatmul.mubr.msk.f32.vlgmr.msra.gmra.mxu1 %vm582_vm3, %v611_v21  ;;  %v1054_v21 = vsub.s32 2, %v2133_v8 }
 0x1a1   : > { %1614 = vmatprep.mubr.msk.f32.mxu1 %vm1904_vm1, %v1903_v2 }
 0x25c   : > { %v689_v22 = vpop.f32.mrf.mxu1 }
 0x25d   : > { %v769_v24 = vmul.f32 0.25, %v689_v22  ;;  %v1059_v22 = vsub.s32 3, %v2133_v8 }
 0x25e   : > { %v1601_v25 = vpop.f32.mrf.mxu1 }
 0x25f   : > { %v777_v26 = vadd.f32 %v1534_v23, %v769_v24 }
 0x260   : > { %v765_v27 = vpop.f32.mrf.mxu1 }
 0x261   : > { %v770_v28 = vmul.f32 0.25, %v765_v27  ;;  %v780_v29 = vsel %vm779_vm4, %v777_v26, -inf }
 0x262   : > { %781 = vmax.xlane.f32.xlu0 %v780_v29  ;;  %v1606_v30 = vpop.f32.mrf.mxu1  ;;  %v1159_v29 = vld [vmem:[%s2104_s11 + $0x38] sm:$0xff] }
 0x263   : > { %v778_v31 = vadd.f32 %v1534_v23, %v770_v28  ;;  %v1055_v23 = vrot.slane %v2137_v10, %v1054_v21  ;;  %v1158_v30 = vld [vmem:[%s2104_s11 + $0x30] sm:$0xff] }
 0x265   : > { %v783_v32 = vsel %vm779_vm4, %v778_v31, -inf }
 0x266   : > { %784 = vmax.xlane.f32.xlu1 %v783_v32  ;;  %v1156_v32 = vld [vmem:[%s2104_s11 + $0x20] sm:$0xff] }
 0x277   : > { %605 = vrot.lane.b32.xlu1 %v579_v13, %s1908_s25 }
 0x2eb   : > { %v782_v33 = vpop.xlane.xlu0 %781 }
 0x2ec   : > { %v786_v34 = vsub.f32 %v777_v26, %v782_v33  ;;  %v1060_v26 = vrot.slane %v2137_v10, %v1059_v22  ;;  %v1155_v33 = vld [vmem:[%s2104_s11 + $0x18] sm:$0xff] }
 0x2ee   : > { %v788_v37 = vmul.f32 1.442695, %v786_v34  ;;  %v1154_v34 = vld [vmem:[%s2104_s11 + $0x10] sm:$0xff] }
 0x2ef   : > { %v785_v35 = vpop.xlane.xlu1 %784 }
 0x2f0   : > { %v787_v36 = vsub.f32 %v778_v31, %v785_v35  ;;  %v1157_v31 = vld [vmem:[%s2104_s11 + $0x28] sm:$0xff] }
 0x2f1   : > { %v1153_v35 = vld [vmem:[%s2104_s11 + $0x8] sm:$0xff] }
 0x2f2   : > { %v790_v38 = vmul.f32 1.442695, %v787_v36  ;;  %v1152_v36 = vld [vmem:[%s2104_s11] sm:$0xff] }
 0x2f3   : > { %v606_v39 = vpop.permute.xlu1 %605 }
 0x2f4   : > { %1757 = vpow2.f32 %v790_v38  ;;  %609 = vst.msk [vmem:[#allocation3 + $0x28] sm:$0xff] %vm582_vm3, %v606_v39 }
 0x2f5   : > { %1759 = vpow2.f32 %v788_v37  ;;  %v1068_v37 = vsub.s32 4, %v2133_v8 }
 0x2f7   : > { %v1069_v38 = vrot.slane %v2137_v10, %v1068_v37 }
 0x2fb   : > { %v615_v40 = vld [vmem:[#allocation3 + $0x28] sm:$0xff] }
 0x2fc   : > { %1613 = vmatpush3.msra.mxu1 %v615_v40 }
 0x2fd   : > { %1628 = vmatprep.subr.mxu1 %v1903_v2 }
 0x301   : > { %v1758_v41 = vpop.eup %1757 }
 0x302   : > { %v795_v42 = vsel %vm779_vm4, %v1758_v41, 0.0  ;;  %v1760_v43 = vpop.eup %1759 }
 0x303   : > { %796 = vadd.xlane.f32.xlu0 %v795_v42  ;;  %v792_v44 = vsel %vm779_vm4, %v1760_v43, 0.0 }
 0x307   : > { %793 = vadd.xlane.f32.xlu0 %v792_v44 }
 0x31d   : > { %590 = vrot.lane.b32.xlu0 %v579_v13, %s1909_s13 }
 0x38c   : > { %v797_v45 = vpop.xlane.xlu0 %796 }
 0x38d   : > { %1761 = vrcp.f32 %v797_v45 }
 0x390   : > { %v794_v46 = vpop.xlane.xlu0 %793 }
 0x391   : > { %1763 = vrcp.f32 %v794_v46 }
 0x394   : > { %v591_v47 = vpop.permute.xlu0 %590 }
 0x395   : > { %594 = vst.msk [vmem:[#allocation3 + $0x20] sm:$0xff] %vm582_vm3, %v591_v47 }
 0x39a   : > { %v1762_v48 = vpop.eup %1761 }
 0x39b   : > { %v801_v49 = vmul.f32 %v1762_v48, %v1758_v41 }
 0x39c   : > { %v614_v50 = vld [vmem:[#allocation3 + $0x20] sm:$0xff] }
 0x39d   : > { %1608 = vmatpush3.msra.mxu0 %v614_v50  ;;  %1615 = vmatmul.mubr.msk.f32.vlgmr.msra.gmra.mxu1 %vm779_vm4, %v801_v49 }
 0x39e   : > { %v1764_v51 = vpop.eup %1763  ;;  %1617 = vmatprep.subr.mxu0 %v1903_v2  ;;  %1636 = vmatprep.mubr.msk.f32.mxu1 %vm1904_vm1, %v1903_v2 }
 0x39f   : > { %v800_v52 = vmul.f32 %v1764_v51, %v1760_v43  ;;  %1629 = vmatpush3.msra.mxu1 %v1065_v15 }
 0x3a0   : > { %1630 = vmatprep.subr.mxu1 %v1903_v2 }
 0x3a1   : > { %1610 = vmatmul.mubr.msk.f32.vlgmr.msra.gmra.mxu0 %vm779_vm4, %v800_v52  ;;  %1631 = vmatpush3.msra.mxu1 %v1064_v16 }
 0x3a2   : > { %1625 = vmatprep.mubr.msk.f32.mxu0 %vm1904_vm1, %v1903_v2  ;;  %1618 = vmatpush3.msra.mxu0 %v959_v53 }
 0x3a3   : > { %1619 = vmatprep.subr.mxu0 %v1903_v2  ;;  %1632 = vmatprep.subr.mxu1 %v1903_v2 }
 0x3a4   : > { %1620 = vmatpush3.msra.mxu0 %v958_v54  ;;  %1633 = vmatpush3.msra.mxu1 %v1063_v17 }
 0x3a5   : > { %1621 = vmatprep.subr.mxu0 %v1903_v2  ;;  %1634 = vmatprep.subr.mxu1 %v1903_v2 }
 0x3a6   : > { %1622 = vmatpush3.msra.mxu0 %v957_v55 }
 0x3a7   : > { %1623 = vmatprep.subr.mxu0 %v1903_v2 }
 0x3a8   : > { %1624 = vmatpush3.msra.mxu0 %v956_v56 }
 0x3a9   : > { %1639 = vmatprep.subr.mxu0 %v1903_v2 }
 0x45d   : > { %v944_v57 = vpop.f32.mrf.mxu1 }
 0x45e   : > { %950 = vrot.lane.b32.xlu1 %v944_v57, %s1910_s20 }
 0x45f   : > { %v1616_v58 = vpop.f32.mrf.mxu1 }
 0x461   : > { %v871_v59 = vpop.f32.mrf.mxu0 }
 0x462   : > { %948 = vst.msk [vmem:[#allocation4] sm:$0xff] %vm582_vm3, %v871_v59 }
 0x463   : > { %v1611_v60 = vpop.f32.mrf.mxu0 }
 0x4d0   : > { %v951_v61 = vpop.permute.xlu1 %950 }
 0x4d1   : > { %954 = vst.msk [vmem:[#allocation4] sm:$0xff] %vm953_vm5, %v951_v61 }
 0x4d8   : > { %v955_v62 = vld [vmem:[#allocation4] sm:$0xff] }
 0x4d9   : > { %1626 = vmatmul.mubr.msk.f32.vlgmr.msra.gmra.mxu0 %vm508_vm2, %v955_v62 }
 0x4da   : > { %1655 = vmatprep.mubr.msk.f32.mxu0 %vm1904_vm1, %v1903_v2  ;;  %1640 = vmatpush3.msra.mxu0 %v1159_v29 }
 0x4db   : > { %1641 = vmatprep.subr.mxu0 %v1903_v2 }
 0x4dc   : > { %1642 = vmatpush3.msra.mxu0 %v1158_v30 }
 0x4dd   : > { %1643 = vmatprep.subr.mxu0 %v1903_v2 }
 0x4de   : > { %1644 = vmatpush3.msra.mxu0 %v1157_v31 }
 0x4df   : > { %1645 = vmatprep.subr.mxu0 %v1903_v2 }
 0x4e0   : > { %1646 = vmatpush3.msra.mxu0 %v1156_v32 }
 0x4e1   : > { %1647 = vmatprep.subr.mxu0 %v1903_v2 }
 0x4e2   : > { %1648 = vmatpush3.msra.mxu0 %v1155_v33 }
 0x4e3   : > { %1649 = vmatprep.subr.mxu0 %v1903_v2 }
 0x4e4   : > { %1650 = vmatpush3.msra.mxu0 %v1154_v34 }
 0x4e5   : > { %1651 = vmatprep.subr.mxu0 %v1903_v2 }
 0x4e6   : > { %1652 = vmatpush3.msra.mxu0 %v1153_v35 }
 0x4e7   : > { %1653 = vmatprep.subr.mxu0 %v1903_v2  ;;  %v1162_v2 = vsub.s32 5, %v2133_v8 }
 0x4e8   : > { %1654 = vmatpush3.msra.mxu0 %v1152_v36 }
 0x4e9   : > { %v1163_v51 = vrot.slane %v2137_v10, %v1162_v2 }
 0x599   : > { %v1033_v1 = vpop.f32.mrf.mxu0 }
 0x59a   : > { %v1034_v3 = vadd.f32 %v1033_v1, %v963_v0  ;;  %v1254_v1 = vsub.s32 6, %v2133_v8 }
 0x59b   : > { %v1627_v4 = vpop.f32.mrf.mxu0 }
 0x59c   : > { %v1037_v5 = vadd.f32 %v1034_v3, %v2125_v6  ;;  %v1062_v6 = vld [vmem:[%s2078_s18] sm:$0xff]  ;;  %v1259_v3 = vsub.s32 7, %v2133_v8  ;;  %v1255_v4 = vrot.slane %v2137_v10, %v1254_v1 }
 0x59d   : > { %1635 = vmatpush3.msra.mxu1 %v1062_v6 }
 0x59e   : > { %v1038_v7 = vsel %vm508_vm2, %v1037_v5, 0.0 }
 0x59f   : > { %1039 = vadd.xlane.f32.xlu1 %v1038_v7  ;;  %v1260_v7 = vrot.slane %v2137_v10, %v1259_v3 }
 0x628   : > { %v1040_v9 = vpop.xlane.xlu1 %1039 }
 0x629   : > { %v1042_v11 = vmul.f32 0.03125, %v1040_v9 }
 0x62b   : > { %v1043_v12 = vsub.f32 %v1037_v5, %v1042_v11 }
 0x62d   : > { %v1044_v13 = vmul.f32 %v1043_v12, %v1043_v12 }
 0x62f   : > { %v1045_v14 = vsel %vm508_vm2, %v1044_v13, 0.0 }
 0x630   : > { %1046 = vadd.xlane.f32.xlu0 %v1045_v14 }
 0x6b9   : > { %v1047_v18 = vpop.xlane.xlu0 %1046 }
 0x6ba   : > { %v1048_v19 = vmul.f32 0.03125, %v1047_v18 }
 0x6bc   : > { %v1049_v20 = vadd.f32 1e-12, %v1048_v19 }
 0x6be   : > { %1765 = vrsqrt.f32 %v1049_v20 }
 0x6cb   : > { %v1766_v24 = vpop.eup %1765 }
 0x6cc   : > { %v1051_v25 = vmul.f32 %v1766_v24, %v1043_v12 }
 0x6ce   : > { %v1056_v27 = vmul.f32 %v1055_v23, %v1051_v25 }
 0x6d0   : > { %v1061_v28 = vadd.f32 %v1060_v26, %v1056_v27 }
 0x6d2   : > { %1637 = vmatmul.mubr.msk.f32.vlgmr.msra.gmra.mxu1 %vm508_vm2, %v1061_v28 }
 0x792   : > { %v1139_v39 = vpop.f32.mrf.mxu1 }
 0x793   : > { %v1140_v40 = vadd.f32 %v1139_v39, %v1069_v38 }
 0x794   : > { %v1638_v41 = vpop.f32.mrf.mxu1 }
 0x795   : > { %v1144_v42 = vmul.f32 0.044715, %v1140_v40  ;;  %v1143_v48 = vmul.f32 0.5, %v1140_v40 }
 0x797   : > { %v1145_v43 = vmul.f32 %v1144_v42, %v1140_v40 }
 0x799   : > { %v1146_v44 = vmul.f32 %v1145_v43, %v1140_v40 }
 0x79b   : > { %v1147_v45 = vadd.f32 %v1146_v44, %v1140_v40 }
 0x79d   : > { %v1148_v46 = vmul.f32 0.7978846, %v1147_v45 }
 0x79f   : > { %1767 = vtanh.f32 %v1148_v46 }
 0x7ac   : > { %v1768_v47 = vpop.eup %1767 }
 0x7ad   : > { %v1150_v49 = vadd.f32 1.0, %v1768_v47 }
 0x7af   : > { %v1151_v50 = vmul.f32 %v1150_v49, %v1143_v48 }
 0x7b1   : > { %1656 = vmatmul.mubr.msk.f32.vlgmr.msra.gmra.mxu0 %vm1164_vm6, %v1151_v50 }
 0x871   : > { %v1234_v52 = vpop.f32.mrf.mxu0 }
 0x872   : > { %v1235_v53 = vadd.f32 %v1234_v52, %v1163_v51 }
 0x873   : > { %v1657_v54 = vpop.f32.mrf.mxu0 }
 0x874   : > { %v1238_v55 = vadd.f32 %v1235_v53, %v1061_v28 }
 0x876   : > { %v1239_v56 = vsel %vm508_vm2, %v1238_v55, 0.0 }
 0x877   : > { %1240 = vadd.xlane.f32.xlu1 %v1239_v56 }
 0x900   : > { %v1241_v57 = vpop.xlane.xlu1 %1240 }
 0x901   : > { %v1242_v58 = vmul.f32 0.03125, %v1241_v57 }
 0x903   : > { %v1243_v59 = vsub.f32 %v1238_v55, %v1242_v58 }
 0x905   : > { %v1244_v60 = vmul.f32 %v1243_v59, %v1243_v59 }
 0x907   : > { %v1245_v61 = vsel %vm508_vm2, %v1244_v60, 0.0 }
 0x908   : > { %1246 = vadd.xlane.f32.xlu0 %v1245_v61 }
 0x991   : > { %v1247_v62 = vpop.xlane.xlu0 %1246 }
 0x992   : > { %v1248_v63 = vmul.f32 0.03125, %v1247_v62 }
 0x994   : > { %v1249_v0 = vadd.f32 1e-12, %v1248_v63 }
 0x996   : > { %1769 = vrsqrt.f32 %v1249_v0 }
 0x9a3   : > { %v1770_v5 = vpop.eup %1769 }
 0x9a4   : > { %v1251_v9 = vmul.f32 %v1770_v5, %v1243_v59 }
 0x9a6   : > { %v1256_v11 = vmul.f32 %v1255_v4, %v1251_v9  ;;  %1266 = sbr.rel (%p1540_p4) target bundleno = 2680 (0xa78), region = 72 }
 0x9a8   : > { %v1261_v12 = vadd.f32 %v1260_v7, %v1256_v11 }
 0x9aa   : > { %1262 = vst.msk [vmem:[#allocation2] sm:$0xff] %vm508_vm2, %v1261_v12 }
 0x9ab   : > { %v1270_v13 = vld [vmem:[%s2277_s7 + $0x18] sm:$0xff]  ;;  %v1911_v14 = vmov 0.0   ;;  %v1269_v8 = vld [vmem:[%s2277_s7 + $0x10] sm:$0xff]  ;;  %vm1912_vm7 = vmmov 0   ;;  %v1268_v10 = vld [vmem:[%s2277_s7 + $0x8] sm:$0xff] }
 0x9ac   : > { %1658 = vmatprep.subr.mxu0 %v1911_v14  ;;  %1666 = vmatprep.mubr.msk.f32.mxu0 %vm1912_vm7, %v1911_v14  ;;  %v1267_v15 = vld [vmem:[%s2277_s7] sm:$0xff] }
 0x9ad   : > { %1659 = vmatpush3.msra.mxu0 %v1270_v13  ;;  %v1541_v16 = vld [vmem:[%s2278_s8] ss:$0 sm:$0xff] }
 0x9ae   : > { %1660 = vmatprep.subr.mxu0 %v1911_v14 }
 0x9af   : > { %1661 = vmatpush3.msra.mxu0 %v1269_v8 }
 0x9b0   : > { %1662 = vmatprep.subr.mxu0 %v1911_v14 }
 0x9b1   : > { %1663 = vmatpush3.msra.mxu0 %v1268_v10 }
 0x9b2   : > { %1664 = vmatprep.subr.mxu0 %v1911_v14 }
 0x9b3   : > { %1665 = vmatpush3.msra.mxu0 %v1267_v15 }
 0x9b4   : > { %1667 = vmatmul.mubr.msk.f32.vlgmr.msra.gmra.mxu0 %vm508_vm2, %v1261_v12 }
 0xa74   : > { %v1347_v17 = vpop.f32.mrf.mxu0 }
 0xa75   : > { %v1348_v6 = vadd.f32 %v1541_v16, %v1347_v17 }
 0xa76   : > { %v1668_v18 = vpop.f32.mrf.mxu0 }
 0xa77   : > { %1351 = vst [vmem:[%s2114_s29] sm:$0xff] %v1348_v6 }
 0xa78 PF: > { %s2304_s11 = sld [smem:[#allocation15_spill]] }
 0xa79   : > { %s2305_s30 = sld [smem:[#allocation11_spill]] }
 0xa7a   : > { %s2306_s10 = sld [smem:[#allocation12_spill]] }
 0xa7b   : > { %s2308_s12 = sld [smem:[#allocation13_spill]] }
 0xa7c   : > { %s2309_s13 = sld [smem:[#allocation14_spill]] }
 0xa7d   : > { %s2310_s14 = sld [smem:[#allocation16_spill]] }
 0xa7e   : > { %s25_s16 = sadd.s32 1, %s2304_s11   ;;  %s2307_s11 = sld [smem:[#allocation18_spill]] }
 0xa7f   : > { %p22_p5 = scmp.ge.s32.totalorder %s25_s16, 6   ;;  %s2311_s15 = sld [smem:[#allocation17_spill]] }
 0xa81   :  { %24 = sbr.rel (!%p22_p5) target bundleno = 10 (0xa), region = 137 }
 0xa86   :  { %1371 = vsyncpa [#allocation6], 1 }
 0xa87   :  { %1373 = vsyncpa [#allocation6 + $0x1], 1 }
 0xa88   :  { %1374 = vsyncpa [#allocation8], 1 }
 0xa89   :  { %1376 = vsyncpa [#allocation8 + $0x1], 1 }

</bundles_post_ra>
